<compile_context>
chip_gen: v7x
topology: tpu7x:2x2x1
jax: 0.10.0
libtpu: 0.0.40
codegen_flags: <defaults>
</compile_context>

<pallas_src>
import math
from functools import partial

import jax
import jax.numpy as jnp
from jax.experimental import pallas as pl
from jax.experimental.pallas import tpu as pltpu


def _norm_kernel(x_ref, alpha_ref, bias_ref, o_ref, *, eps, inv_h, inv_hm1):
    # x_ref: (TR, H) tile; alpha_ref/bias_ref: (1, H) f32 (pre-cast in wrapper)
    # Single f32 full-tile value kept live; reused for both the reduction and
    # the normalized output (no separate centered copy materialized in VMEM).
    x = x_ref[...].astype(jnp.float32)

    s = jnp.sum(x, axis=-1, keepdims=True)            # XLU cross-lane reduce
    mean = s * inv_h
    ss = jnp.sum(x * x, axis=-1, keepdims=True)
    # Unbiased variance: (sum(x^2) - n*mean^2) / (n-1) = (ss - s*mean)/(n-1).
    # Clamp >= 0 to guard against E[x^2]-E[x]^2 cancellation for large means.
    # TODO(synk): fall back to the two-pass centered form if accuracy ever
    # regresses for inputs with |mean| >> std.
    var = jnp.maximum((ss - s * mean) * inv_hm1, 0.0)
    std = jnp.sqrt(var)

    # One reciprocal per row (TR,1). Exact form: the kernel is HBM-bound on
    # all generations, so EUP approx buys nothing measurable.
    inv = pl.reciprocal(std + eps, approx=False)

    y = alpha_ref[...] * ((x - mean) * inv) + bias_ref[...]
    o_ref[...] = y.astype(o_ref.dtype)


def _norm_xla(x, alpha, bias, eps, inv_hm1):
    """Lane-dense fallback for hidden < 128 (masked vst path not worth Pallas)."""
    xf = x.astype(jnp.float32)
    mean = jnp.mean(xf, axis=-1, keepdims=True)
    xc = xf - mean
    var = jnp.sum(xc * xc, axis=-1, keepdims=True) * inv_hm1
    std = jnp.sqrt(var)
    y = alpha.astype(jnp.float32) * (xc / (std + eps)) + bias.astype(jnp.float32)
    return y.astype(x.dtype)


def _vmem_capacity_bytes():
    try:
        info = pltpu.get_tpu_info()
        cap = getattr(info, "vmem_capacity_bytes", None)
        if cap:
            return int(cap)
    except Exception:
        pass
    return 64 * 1024 * 1024  # conservative (v7x per-TC VMEM)


def norm(x, alpha, bias, eps=1e-6, *, tile_rows=None):
    """LayerNorm-style Norm matching the PyTorch module semantics.

    x: (..., hidden); alpha, bias: (hidden,)
    """
    orig_shape = x.shape
    hidden = orig_shape[-1]

    inv_h = 1.0 / hidden
    # hidden == 1 would divide by zero in the unbiased estimator (torch yields
    # NaN there); we map it to zero variance -> output == bias.
    inv_hm1 = 1.0 / (hidden - 1) if hidden > 1 else 0.0

    # Lane-dense fallback: sub-128 hidden makes every store a masked partial
    # store and wastes most vreg lanes — plain XLA handles it better.
    # TODO(synk): a packed re-layout (multiple rows per 128-lane group) could
    # keep these shapes in Pallas, but is not worth it for this memory-bound op.
    if hidden < 128:
        return _norm_xla(x, alpha, bias, eps, inv_hm1)

    x2 = x.reshape(-1, hidden)
    rows = x2.shape[0]

    itemsize = jnp.dtype(x.dtype).itemsize
    # Sublane packing: f32 -> 8 rows/vreg, bf16 -> 16, int8/fp8 -> 32.
    sublane = {4: 8, 2: 16, 1: 32}.get(itemsize, 8)

    vmem_cap = _vmem_capacity_bytes()
    tile_budget = int(0.40 * vmem_cap)
    vmem_limit = int(0.75 * vmem_cap)

    # Per-element VMEM footprint of one row-element at the chosen tile size:
    #   2x double-buffered input + 2x double-buffered output (4 * itemsize)
    #   + f32 x shadow + f32 pre-store scratch (~8 bytes).
    per_elem = 4 * itemsize + 8

    rows_rounded = ((rows + sublane - 1) // sublane) * sublane

    if tile_rows is None:
        max_rows = tile_budget // (per_elem * hidden)
        tile_rows = min(8192, max(sublane, max_rows))
    # Round down to a whole sublane pack, never below one pack.
    tile_rows = max(sublane, (tile_rows // sublane) * sublane)
    # Don't allocate a tile far larger than the input itself.
    tile_rows = min(tile_rows, max(sublane, rows_rounded))
    # Keep >= 8 grid steps when rows permit (>= 4 per TensorCore on v7x, and
    # enough steps for double-buffering to hide DMA on v5e/v6e).
    if rows_rounded >= 8 * sublane:
        tile_rows = min(tile_rows,
                        max(sublane, (rows_rounded // (8 * sublane)) * sublane))

    # Edge case: huge hidden can make even one sublane pack exceed the default
    # limit — raise the limit (capped at physical VMEM) rather than fail.
    est_bytes = per_elem * hidden * tile_rows + 2 * 2 * hidden * 4  # + alpha/bias bufs
    if est_bytes > vmem_limit:
        vmem_limit = min(vmem_cap, int(1.1 * est_bytes) + (1 << 20))

    grid = (pl.cdiv(rows, tile_rows),)

    # Pre-cast params once in the wrapper (no per-grid-step casts in-kernel).
    alpha2 = alpha.reshape(1, hidden).astype(jnp.float32)
    bias2 = bias.reshape(1, hidden).astype(jnp.float32)

    kernel = partial(_norm_kernel, eps=eps, inv_h=inv_h, inv_hm1=inv_hm1)

    # NOTE: partial last block computes on stale VMEM rows; safe because the
    # reduction is strictly per-row and Pallas clips the out-of-bounds stores.
    # TODO(synk): consider pipeline_mode=pl.Buffered(3) on the x spec on v5e
    # if xprof ever shows exposed DMA on short steps.
    out = pl.pallas_call(
        kernel,
        out_shape=jax.ShapeDtypeStruct((rows, hidden), x.dtype),
        grid_spec=pltpu.PrefetchScalarGridSpec(
            num_scalar_prefetch=0,
            grid=grid,
            in_specs=[
                pl.BlockSpec((tile_rows, hidden), lambda i: (i, 0)),
                pl.BlockSpec((1, hidden), lambda i: (0, 0)),
                pl.BlockSpec((1, hidden), lambda i: (0, 0)),
            ],
            out_specs=pl.BlockSpec((tile_rows, hidden), lambda i: (i, 0)),
        ),
        compiler_params=pltpu.CompilerParams(
            dimension_semantics=("parallel",),
            vmem_limit_bytes=vmem_limit,
        ),
    )(x2, alpha2, bias2)

    return out.reshape(orig_shape)


def _reference(x, alpha, bias, eps):
    hidden = x.shape[-1]
    mean = jnp.mean(x, axis=-1, keepdims=True)
    std = jnp.sqrt(jnp.sum((x - mean) ** 2, axis=-1, keepdims=True) / (hidden - 1))
    return alpha * (x - mean) / (std + eps) + bias


if __name__ == "__main__":
    key = jax.random.PRNGKey(0)

    # Lane-dense shape exercising the Pallas path (hidden multiple of 128).
    batch, seq, hidden = 2, 8, 256
    x = jax.random.normal(key, (batch, seq, hidden), dtype=jnp.float32)
    alpha = jnp.ones((hidden,), dtype=jnp.float32)
    bias = jnp.zeros((hidden,), dtype=jnp.float32)

    out = norm(x, alpha, bias, eps=1e-6)
    jax.block_until_ready(out)
    ref = _reference(x, alpha, bias, 1e-6)
    assert jnp.allclose(out, ref, atol=1e-5, rtol=1e-5), "mismatch vs reference (pallas path)"

    # Sub-128 hidden (the module's typical small demo, hidden=32) goes through
    # the lane-dense XLA fallback; verify it matches torch semantics too.
    hidden_s = 32
    xs = jax.random.normal(jax.random.PRNGKey(0), (batch, seq, hidden_s), dtype=jnp.float32)
    alpha_s = jnp.ones((hidden_s,), dtype=jnp.float32)
    bias_s = jnp.zeros((hidden_s,), dtype=jnp.float32)
    outs = norm(xs, alpha_s, bias_s, eps=1e-6)
    jax.block_until_ready(outs)
    refs = _reference(xs, alpha_s, bias_s, 1e-6)
    assert jnp.allclose(outs, refs, atol=1e-5, rtol=1e-5), "mismatch vs reference (fallback path)"

    print("KERNEL_OK")
</pallas_src>

<mosaic_0001>
module attributes {stable_mosaic.version = 11 : i64} {
  func.func @_norm_kernel(%arg0: i32, %arg1: memref<16x256xf32, #tpu.memory_space<vmem>>, %arg2: memref<1x256xf32, #tpu.memory_space<vmem>>, %arg3: memref<1x256xf32, #tpu.memory_space<vmem>>, %arg4: memref<16x256xf32, #tpu.memory_space<vmem>>) attributes {dimension_semantics = [#tpu.dimension_semantics<parallel>], iteration_bounds = array<i64: 1>, scalar_prefetch = 0 : i64, scratch_operands = 0 : i64, tpu.core_type = #tpu.core_type<tc>, window_params = [{transform_indices = @transform_0, window_bounds = array<i64: 16, 256>}, {pipeline_mode = #tpu.pipeline_mode<synchronous>, transform_indices = @transform_1, window_bounds = array<i64: 1, 256>}, {pipeline_mode = #tpu.pipeline_mode<synchronous>, transform_indices = @transform_2, window_bounds = array<i64: 1, 256>}, {transform_indices = @transform_3, window_bounds = array<i64: 16, 256>}]} {
    %c0 = arith.constant 0 : index
    %c0_0 = arith.constant 0 : index
    %0 = vector.load %arg1[%c0, %c0_0] : memref<16x256xf32, #tpu.memory_space<vmem>>, vector<16x256xf32>
    %cst = arith.constant dense<0.000000e+00> : vector<16xf32>
    %1 = vector.multi_reduction <add>, %0, %cst [1] : vector<16x256xf32> to vector<16xf32>
    %2 = vector.shape_cast %1 : vector<16xf32> to vector<16x1xf32>
    %cst_1 = arith.constant 3.906250e-03 : f32
    %3 = vector.broadcast %cst_1 : f32 to vector<16x1xf32>
    %4 = arith.mulf %2, %3 : vector<16x1xf32>
    %5 = arith.mulf %0, %0 : vector<16x256xf32>
    %cst_2 = arith.constant dense<0.000000e+00> : vector<16xf32>
    %6 = vector.multi_reduction <add>, %5, %cst_2 [1] : vector<16x256xf32> to vector<16xf32>
    %7 = vector.shape_cast %6 : vector<16xf32> to vector<16x1xf32>
    %8 = arith.mulf %2, %4 : vector<16x1xf32>
    %9 = arith.subf %7, %8 : vector<16x1xf32>
    %cst_3 = arith.constant 0.00392156886 : f32
    %10 = vector.broadcast %cst_3 : f32 to vector<16x1xf32>
    %11 = arith.mulf %9, %10 : vector<16x1xf32>
    %cst_4 = arith.constant 0.000000e+00 : f32
    %12 = vector.broadcast %cst_4 : f32 to vector<16x1xf32>
    %13 = arith.maximumf %11, %12 : vector<16x1xf32>
    %14 = math.sqrt %13 : vector<16x1xf32>
    %cst_5 = arith.constant 9.99999997E-7 : f32
    %15 = vector.broadcast %cst_5 : f32 to vector<16x1xf32>
    %16 = arith.addf %14, %15 : vector<16x1xf32>
    %17 = tpu.reciprocal %16 : vector<16x1xf32> -> vector<16x1xf32>
    %c0_6 = arith.constant 0 : index
    %c0_7 = arith.constant 0 : index
    %18 = vector.load %arg2[%c0_6, %c0_7] : memref<1x256xf32, #tpu.memory_space<vmem>>, vector<1x256xf32>
    %19 = vector.broadcast %4 : vector<16x1xf32> to vector<16x256xf32>
    %20 = arith.subf %0, %19 : vector<16x256xf32>
    %21 = vector.broadcast %17 : vector<16x1xf32> to vector<16x256xf32>
    %22 = arith.mulf %20, %21 : vector<16x256xf32>
    %23 = vector.broadcast %18 : vector<1x256xf32> to vector<16x256xf32>
    %24 = arith.mulf %23, %22 : vector<16x256xf32>
    %c0_8 = arith.constant 0 : index
    %c0_9 = arith.constant 0 : index
    %25 = vector.load %arg3[%c0_8, %c0_9] : memref<1x256xf32, #tpu.memory_space<vmem>>, vector<1x256xf32>
    %26 = vector.broadcast %25 : vector<1x256xf32> to vector<16x256xf32>
    %27 = arith.addf %24, %26 : vector<16x256xf32>
    %c0_10 = arith.constant 0 : index
    %c0_11 = arith.constant 0 : index
    %28 = vector.load %arg4[%c0_10, %c0_11] : memref<16x256xf32, #tpu.memory_space<vmem>>, vector<16x256xf32>
    tpu.vector_store %arg4[%c0_10, %c0_11], %27 {strides = array<i32>} : memref<16x256xf32, #tpu.memory_space<vmem>>, vector<16x256xf32>,
    return
  }
  func.func @transform_0(%arg0: i32) -> (i32, i32) {
    %c0_i32 = arith.constant 0 : i32
    %c0_i32_0 = arith.constant 0 : i32
    return %arg0, %c0_i32 : i32, i32
  }
  func.func @transform_1(%arg0: i32) -> (i32, i32) {
    %c0_i32 = arith.constant 0 : i32
    %c0_i32_0 = arith.constant 0 : i32
    %c0_i32_1 = arith.constant 0 : i32
    return %c0_i32, %c0_i32_0 : i32, i32
  }
  func.func @transform_2(%arg0: i32) -> (i32, i32) {
    %c0_i32 = arith.constant 0 : i32
    %c0_i32_0 = arith.constant 0 : i32
    %c0_i32_1 = arith.constant 0 : i32
    return %c0_i32, %c0_i32_0 : i32, i32
  }
  func.func @transform_3(%arg0: i32) -> (i32, i32) {
    %c0_i32 = arith.constant 0 : i32
    %c0_i32_0 = arith.constant 0 : i32
    return %arg0, %c0_i32 : i32, i32
  }
}

</mosaic_0001>

<bundles_post_ra>
// kernel: tpu_custom_call.1
= control target key start
LH: loop header
LB: loop body
LE: loop exit
PB: predicated region body
PF: predicated region fallthrough
CT: control target
= control target key end

     0   :  { %8 = vsyncpa [#allocation3], 0  ;;  %s270_s0 = inlined_call_operand.hbm [shape: f32[16,256], index: 0, kind: input, shape index: {}]   ;;  %s271_s1 = inlined_call_operand.vmem [shape: f32[1,256], index: 1, kind: input, shape index: {}]   ;;  %s272_s2 = inlined_call_operand.vmem [shape: f32[1,256], index: 2, kind: input, shape index: {}]   ;;  %s273_s3 = inlined_call_operand.hbm [shape: f32[16,256], index: 3, kind: output, shape index: {}]  }
   0x1   :  { %9 = vsyncpa [#allocation4], 0  ;;  %s198_s12 = smov [#allocation2]   ;;  %s150_s16 = scalar_lea.hbm %s270_s0, 512 }
   0x2   :  { %s15_s13 = sshll.u32 %s198_s12, 4  ;;  %p151_p0 = scmp.ne.s32.totalorder %s270_s0, %s150_s16  ;;  %s16_s13 = int_to_ptr.vmem [resolvable:$true] %s15_s13 }
   0x3   :  { %p154_p1 = scmp.lt.u32.totalorder %s150_s16, %s270_s0 }
   0x5   :  { %p156_p2 = pnand %p154_p1, %p151_p0 }
   0x7   :  { %159 = shalt.err (!%p156_p2)
}
   0x8   :  { %s160_s21 = scalar_lea.vmem %s16_s13, 512  ;;  %p165_p4 = scmp.lt.s32.totalorder %s16_s13, %s16_s13 }
   0x9   :  { %p161_p3 = scmp.ne.s32.totalorder %s16_s13, %s160_s21  ;;  %p166_p5 = scmp.lt.s32.totalorder %s160_s21, %s160_s21 }
   0xb   :  { %p167_p6 = por %p166_p5, %p165_p4 }
   0xd   :  { %p168_p7 = pnand %p167_p6, %p161_p3 }
   0xf   :  { %171 = shalt.err (!%p168_p7)
}
  0x10   :  { %s199_s22 = smov 256   ;;  %s200_s23 = smov 16  }
  0x11   :  { %21 = dma.hbm_to_vmem [thread:$0]  %s270_s0, 512, %s16_s13, [#allocation3], %s199_s22, %s199_s22, %s200_s23  }
  0x12   :  { %194 = dma.done.wait [#allocation3], 512  }
  0x13   :  { %195 = vsyncadd [#allocation3], 4294966784  ;;  %v29_v0 = vld [vmem:[#allocation2] sm:$0xff]  ;;  %v30_v1 = vld [vmem:[#allocation2 + $0x8] sm:$0xff]  ;;  %v87_v31 = vlaneseq }
  0x14   :  { %v237_v2 = vld [vmem:[#allocation2 + $0x10] sm:$0xff]  ;;  %v33_v3 = vadd.f32 %v30_v1, %v29_v0  ;;  %v41_v4 = vmul.f32 %v29_v0, %v29_v0  ;;  %v42_v5 = vmul.f32 %v30_v1, %v30_v1  ;;  %v239_v6 = vld [vmem:[#allocation2 + $0x18] sm:$0xff]  ;;  %v77_v42 = vld [vmem:[%s271_s1] sm:$0x3]  ;;  %s201_s1 = smov [#allocation5]  }
  0x15   :  { %v43_v7 = vmul.f32 %v237_v2, %v237_v2  ;;  %v44_v8 = vmul.f32 %v239_v6, %v239_v6  ;;  %v36_v10 = vadd.f32 %v239_v6, %v237_v2  ;;  %v88_v37 = vshrl.u32 %v87_v31, 7  ;;  %v101_v43 = vld [vmem:[%s272_s2] sm:$0x3]  ;;  %s126_s2 = sshll.u32 %s201_s1, 4  ;;  %s127_s2 = int_to_ptr.vmem [resolvable:$true] %s126_s2 }
  0x16   :  { %34 = vadd.xlane.f32.xlu0 %v33_v3  ;;  %v45_v9 = vadd.f32 %v42_v5, %v41_v4  ;;  %s172_s29 = scalar_lea.vmem %s127_s2, 512  ;;  %p177_p9 = scmp.lt.s32.totalorder %s127_s2, %s127_s2 }
  0x17   :  { %v48_v11 = vadd.f32 %v44_v8, %v43_v7  ;;  %v89_v40 = vsub.s32 0, %v88_v37  ;;  %v93_v41 = vsub.s32 1, %v88_v37  ;;  %p173_p8 = scmp.ne.s32.totalorder %s127_s2, %s172_s29  ;;  %p178_p10 = scmp.lt.s32.totalorder %s172_s29, %s172_s29 }
  0x18   :  { %46 = vadd.xlane.f32.xlu1 %v45_v9 }
  0x19   :  { %v90_v46 = vrot.slane %v77_v42, %v89_v40  ;;  %v94_v47 = vrot.slane %v77_v42, %v93_v41  ;;  %v106_v51 = vrot.slane %v101_v43, %v89_v40  ;;  %v110_v52 = vrot.slane %v101_v43, %v93_v41  ;;  %p179_p11 = por %p178_p10, %p177_p9 }
  0x1a   :  { %37 = vadd.xlane.f32.xlu0 %v36_v10 }
  0x1b   :  { %p180_p12 = pnand %p179_p11, %p173_p8 }
  0x1c   :  { %49 = vadd.xlane.f32.xlu1 %v48_v11 }
  0xa3   :  { %v35_v12 = vpop.xlane.xlu0 %34 }
  0xa4   :  { %v39_v13 = vmul.f32 0.00390625, %v35_v12 }
  0xa5   :  { %v47_v14 = vpop.xlane.xlu1 %46 }
  0xa6   :  { %v51_v15 = vmul.f32 %v39_v13, %v35_v12  ;;  %v78_v44 = vsub.f32 %v29_v0, %v39_v13  ;;  %v79_v45 = vsub.f32 %v30_v1, %v39_v13 }
  0xa7   :  { %v38_v16 = vpop.xlane.xlu0 %37 }
  0xa8   :  { %v53_v17 = vsub.f32 %v47_v14, %v51_v15  ;;  %v40_v18 = vmul.f32 0.00390625, %v38_v16 }
  0xa9   :  { %v50_v19 = vpop.xlane.xlu1 %49 }
  0xaa   :  { %v55_v20 = vmul.f32 0.003921569, %v53_v17  ;;  %v52_v21 = vmul.f32 %v40_v18, %v38_v16  ;;  %v80_v55 = vsub.f32 %v237_v2, %v40_v18  ;;  %v81_v56 = vsub.f32 %v239_v6, %v40_v18 }
  0xac   :  { %v57_v22 = vmax.f32 %v55_v20, 0.0  ;;  %v54_v23 = vsub.f32 %v50_v19, %v52_v21 }
  0xae   :  { %142 = vrsqrt.f32 %v57_v22  ;;  %v56_v24 = vmul.f32 0.003921569, %v54_v23  ;;  %vm61_vm0 = vcmp.eq.f32.partialorder %v57_v22, inf  ;;  %v64_v28 = vand.u32 2147483648, %v57_v22 }
  0xaf   :  { %vm63_vm1 = vcmp.eq.f32.partialorder %v57_v22, 0.0 }
  0xb0   :  { %v58_v25 = vmax.f32 %v56_v24, 0.0 }
  0xb2   :  { %144 = vrsqrt.f32 %v58_v25  ;;  %vm68_vm2 = vcmp.eq.f32.partialorder %v58_v25, inf  ;;  %v71_v35 = vand.u32 2147483648, %v58_v25  ;;  %vm70_vm3 = vcmp.eq.f32.partialorder %v58_v25, 0.0 }
  0xb8   :  { %v143_v26 = vpop.eup %142 }
  0xb9   :  { %v60_v27 = vmul.f32 %v143_v26, %v57_v22 }
  0xbb   :  { %v62_v29 = vsel %vm61_vm0, %v57_v22, %v60_v27 }
  0xbc   :  { %v65_v30 = vsel %vm63_vm1, %v64_v28, %v62_v29  ;;  %v145_v32 = vpop.eup %144 }
  0xbd   :  { %v73_v33 = vadd.f32 1e-06, %v65_v30  ;;  %v67_v34 = vmul.f32 %v145_v32, %v58_v25 }
  0xbf   :  { %146 = vrcp.f32 %v73_v33  ;;  %v69_v36 = vsel %vm68_vm2, %v58_v25, %v67_v34 }
  0xc0   :  { %v72_v38 = vsel %vm70_vm3, %v71_v35, %v69_v36 }
  0xc1   :  { %v74_v39 = vadd.f32 1e-06, %v72_v38 }
  0xc3   :  { %148 = vrcp.f32 %v74_v39 }
  0xc9   :  { %v147_v48 = vpop.eup %146 }
  0xca   :  { %v82_v49 = vmul.f32 %v147_v48, %v78_v44  ;;  %v83_v50 = vmul.f32 %v147_v48, %v79_v45 }
  0xcc   :  { %v97_v53 = vmul.f32 %v90_v46, %v82_v49  ;;  %v98_v54 = vmul.f32 %v94_v47, %v83_v50 }
  0xcd   :  { %v149_v57 = vpop.eup %148 }
  0xce   :  { %v113_v58 = vadd.f32 %v106_v51, %v97_v53  ;;  %v114_v59 = vadd.f32 %v110_v52, %v98_v54  ;;  %v84_v60 = vmul.f32 %v149_v57, %v80_v55  ;;  %v85_v61 = vmul.f32 %v149_v57, %v81_v56 }
  0xd0   :  { %117 = vst [vmem:[#allocation5] sm:$0xff] %v113_v58  ;;  %118 = vst [vmem:[#allocation5 + $0x8] sm:$0xff] %v114_v59  ;;  %v99_v62 = vmul.f32 %v90_v46, %v84_v60  ;;  %v100_v63 = vmul.f32 %v94_v47, %v85_v61 }
  0xd2   :  { %v115_v0 = vadd.f32 %v106_v51, %v99_v62  ;;  %v116_v1 = vadd.f32 %v110_v52, %v100_v63 }
  0xd4   :  { %119 = vst [vmem:[#allocation5 + $0x10] sm:$0xff] %v115_v0  ;;  %120 = vst [vmem:[#allocation5 + $0x18] sm:$0xff] %v116_v1 }
  0xd5   :  { %183 = shalt.err (!%p180_p12)
}
  0xd6   :  { %s184_s5 = scalar_lea.hbm %s273_s3, 512 }
  0xd7   :  { %p185_p13 = scmp.ne.s32.totalorder %s273_s3, %s184_s5  ;;  %p188_p0 = scmp.lt.u32.totalorder %s184_s5, %s273_s3 }
  0xd9   :  { %p190_p1 = pnand %p188_p0, %p185_p13 }
  0xdb   :  { %193 = shalt.err (!%p190_p1)
}
  0xdc   :  { %132 = dma.vmem_to_hbm [thread:$0]  %s127_s2, 512, %s273_s3, [#allocation4], %s199_s22, %s199_s22, %s200_s23  }
  0xdd   :  { %196 = dma.done.wait [#allocation4], 512  }
  0xde   :  { %197 = vsyncadd [#allocation4], 4294966784 }
  0xdf   :  { %136 = vsyncpa [#allocation3], 1 }
  0xe0   :  { %137 = vsyncpa [#allocation4], 1 }

</bundles_post_ra>
